<compile_context>
chip_gen: v6e
topology: v6e:2x2x1
jax: 0.10.0
libtpu: 0.0.40
codegen_flags: <defaults>
</compile_context>

<pallas_src>
import jax
import jax.numpy as jnp
from jax.experimental import pallas as pl
from jax.experimental.pallas import tpu as pltpu


_LANE = 128
_TARGET_BLOCK_BYTES = 4 * 1024 * 1024   # "a few MiB" per block copy -> efficient HBM DMAs
_MIN_GRID_STEPS = 2                     # keep both v7x TensorCores busy
_SMALL_CHANNEL_LIMIT = 64               # Cin*Cout <= this -> VPU broadcast-FMA path


def _cdiv(a, b):
    return -(-a // b)


# -----------------------------------------------------------------------------
# Kernels
# -----------------------------------------------------------------------------
def _outconv_mxu_kernel(x_ref, w_ref, b_ref, o_ref):
    """General path (MXU). x:(Nb,Cin,TS) VMEM, w:(Cout,Cin) VMEM, b:(Cout,1) VMEM."""
    w = w_ref[...]
    b = b_ref[...].astype(jnp.float32)
    for n in range(x_ref.shape[0]):                      # static, small unroll
        acc = jnp.dot(w, x_ref[n], preferred_element_type=jnp.float32)  # (Cout, TS)
        o_ref[n] = (acc + b).astype(o_ref.dtype)


def _outconv_vpu_kernel(x_ref, w_ref, b_ref, o_ref):
    """Tiny-channel path: unrolled broadcast-FMA on the VPU (no MXU push/drain).

    x:(Nb,Cin,TS) VMEM, w:(Cout,Cin) SMEM f32 scalars, b:(Cout,) SMEM f32 scalars.
    """
    cin = x_ref.shape[1]
    cout = o_ref.shape[1]
    for o in range(cout):
        acc = x_ref[:, 0, :].astype(jnp.float32) * w_ref[o, 0]
        for c in range(1, cin):
            acc = acc + x_ref[:, c, :].astype(jnp.float32) * w_ref[o, c]
        o_ref[:, o, :] = (acc + b_ref[o]).astype(o_ref.dtype)


# -----------------------------------------------------------------------------
# Block planning
# -----------------------------------------------------------------------------
def _vmem_plan():
    """Generation-aware VMEM budget (pipelined blocks) and compiler limit."""
    try:
        cap = int(pltpu.get_tpu_info().vmem_capacity_bytes)
    except Exception:
        cap = 0
    if cap <= 0:
        cap = 64 * 1024 * 1024           # conservative default (v7x per-TC VMEM)
    budget = (cap * 35) // 100           # ~45 MiB on 128 MiB chips, ~22 MiB on v7x
    limit = min(cap // 2, budget + 24 * 1024 * 1024)
    return budget, limit


def _plan_blocks(N, S, cin, cout, itemsize, vmem_budget_bytes=None):
    """Choose (batch block, spatial tile, buffer depth, vmem_limit_bytes)."""
    budget, vmem_limit = _vmem_plan()
    if vmem_budget_bytes is not None:    # test / tuning override (affects tiling only)
        budget = int(vmem_budget_bytes)

    # Resident weight + bias count against the budget (double-buffered to be safe).
    wb_bytes = 2 * (cout * cin + cout) * itemsize
    avail = budget - wb_bytes

    per_col = (cin + cout) * itemsize    # x + out bytes per (batch, voxel) column
    n_buf = 2
    cap_cols = max(avail // (n_buf * per_col), _LANE)

    # Spatial (lane) tile: whole S when it fits, else the largest lane-dense tile
    # that keeps double-buffered blocks within the budget (clamped, no fixed floor).
    if S <= cap_cols:
        tile_s = S
    else:
        tile_s = (cap_cols // 512) * 512
        if tile_s == 0:
            tile_s = (cap_cols // _LANE) * _LANE
        if tile_s == 0:
            tile_s = int(cap_cols)       # degenerate (enormous channel counts)

    # Batch block: fold several samples per grid step when per-sample blocks are
    # tiny, so DMAs reach the efficient regime and per-step overhead is amortized.
    nb = 1
    if tile_s == S:
        nb_target = max(_TARGET_BLOCK_BYTES // max(S * per_col, 1), 1)
        nb_cap = max(cap_cols // S, 1)
        nb = int(min(N, nb_target, nb_cap))

    # Guarantee >= 2 grid steps so both v7x TensorCores get work (neutral on
    # single-TC v5e/v6e).  Un-fold the batch first, only then split S.
    while nb > 1 and _cdiv(N, nb) * _cdiv(S, tile_s) < _MIN_GRID_STEPS:
        nb = _cdiv(nb, 2)
    if _cdiv(N, nb) * _cdiv(S, tile_s) < _MIN_GRID_STEPS:
        half = _cdiv(S, _MIN_GRID_STEPS)
        split = (half // 512) * 512
        if split == 0:
            split = (half // _LANE) * _LANE
        if split > 0:
            tile_s = split

    # Deeper pipelining when blocks are small and the step count is high.
    block_bytes = nb * tile_s * per_col
    steps = _cdiv(N, nb) * _cdiv(S, tile_s)
    depth = 3 if (block_bytes <= 2 * 1024 * 1024 and steps >= 4) else 2

    return nb, tile_s, depth, vmem_limit


def _buffered_spec(block_shape, index_map, depth):
    """BlockSpec with optional deeper pipelining; falls back to default depth."""
    if depth > 2 and hasattr(pl, "Buffered"):
        try:
            return pl.BlockSpec(block_shape, index_map,
                                pipeline_mode=pl.Buffered(depth))
        except TypeError:
            pass
    return pl.BlockSpec(block_shape, index_map)


# -----------------------------------------------------------------------------
# Public wrapper
# -----------------------------------------------------------------------------
def out_conv(x, weight, bias, *, vmem_budget_bytes=None):
    """1x1x1 Conv3d forward (same math as nn.Conv3d(kernel_size=1)).

    x:      (N, Cin, D, H, W)
    weight: (Cout, Cin, 1, 1, 1)   (PyTorch Conv3d weight layout)
    bias:   (Cout,)
    returns (N, Cout, D, H, W)
    """
    N, Cin, D, H, W = x.shape
    Cout = weight.shape[0]
    S = D * H * W

    # Free reshapes only — no transposes, no pad copies.
    x3 = x.reshape(N, Cin, S)
    w2 = weight.reshape(Cout, Cin)

    nb, tile_s, depth, vmem_limit = _plan_blocks(
        N, S, Cin, Cout, x.dtype.itemsize, vmem_budget_bytes)
    grid = (_cdiv(N, nb), _cdiv(S, tile_s))

    x_spec = _buffered_spec((nb, Cin, tile_s), lambda n, j: (n, 0, j), depth)
    o_spec = _buffered_spec((nb, Cout, tile_s), lambda n, j: (n, 0, j), depth)

    if Cin * Cout <= _SMALL_CHANNEL_LIMIT:
        # Tiny channel counts: VPU broadcast-FMA with SMEM scalar weight/bias.
        kernel = _outconv_vpu_kernel
        w_spec = pl.BlockSpec(memory_space=pltpu.MemorySpace.SMEM)
        b_spec = pl.BlockSpec(memory_space=pltpu.MemorySpace.SMEM)
        w_arg = w2.astype(jnp.float32)
        b_arg = bias.astype(jnp.float32)
    else:
        # General path: MXU matmul with VMEM-resident weight/bias.
        kernel = _outconv_mxu_kernel
        w_spec = pl.BlockSpec((Cout, Cin), lambda n, j: (0, 0))
        b_spec = pl.BlockSpec((Cout, 1), lambda n, j: (0, 0))
        w_arg = w2
        b_arg = bias.reshape(Cout, 1)

    y3 = pl.pallas_call(
        kernel,
        out_shape=jax.ShapeDtypeStruct((N, Cout, S), x.dtype),
        grid_spec=pltpu.PrefetchScalarGridSpec(
            num_scalar_prefetch=0,
            grid=grid,
            in_specs=[x_spec, w_spec, b_spec],
            out_specs=o_spec,
        ),
        compiler_params=pltpu.CompilerParams(
            dimension_semantics=("parallel", "parallel"),
            vmem_limit_bytes=int(vmem_limit),
        ),
    )(x3, w_arg, b_arg)

    return y3.reshape(N, Cout, D, H, W)


def init_outconv_params(key, in_channels, out_channels, dtype=jnp.float32):
    """Deterministic init matching nn.Conv3d parameter shapes (kernel_size=1)."""
    kw, kb = jax.random.split(key)
    bound = 1.0 / jnp.sqrt(jnp.asarray(in_channels, dtype))
    weight = jax.random.uniform(
        kw, (out_channels, in_channels, 1, 1, 1), dtype, minval=-bound, maxval=bound)
    bias = jax.random.uniform(
        kb, (out_channels,), dtype, minval=-bound, maxval=bound)
    return weight, bias


def _reference(x, weight, bias):
    Cout, Cin = weight.shape[0], weight.shape[1]
    y = jnp.einsum("ncdhw,oc->nodhw", x, weight.reshape(Cout, Cin),
                   precision=jax.lax.Precision.HIGHEST)
    return y + bias.reshape(1, Cout, 1, 1, 1)


if __name__ == "__main__":
    key = jax.random.PRNGKey(0)
    k1, k2, k3, k4, k5 = jax.random.split(key, 5)

    # Case 1: aligned spatial size (S = 512), tiny channels -> VPU path.
    N, Cin, Cout = 2, 4, 3
    D = H = W = 8
    x = jax.random.normal(k1, (N, Cin, D, H, W), jnp.float32)
    weight, bias = init_outconv_params(k2, Cin, Cout)
    y = jax.block_until_ready(out_conv(x, weight, bias))
    assert y.shape == (N, Cout, D, H, W)
    assert jnp.allclose(y, _reference(x, weight, bias), atol=1e-5, rtol=1e-5)

    # Case 2: odd spatial size (S = 210, not a multiple of 128; full-dim block).
    x2 = jax.random.normal(k3, (N, Cin, 5, 6, 7), jnp.float32)
    y2 = jax.block_until_ready(out_conv(x2, weight, bias))
    assert y2.shape == (N, Cout, 5, 6, 7)
    assert jnp.allclose(y2, _reference(x2, weight, bias), atol=1e-5, rtol=1e-5)

    # Case 3: larger channel counts -> MXU matmul path.
    Cin3, Cout3 = 16, 8
    x3 = jax.random.normal(k4, (N, Cin3, D, H, W), jnp.float32)
    w3, b3 = init_outconv_params(k5, Cin3, Cout3)
    y3 = jax.block_until_ready(out_conv(x3, w3, b3))
    assert y3.shape == (N, Cout3, D, H, W)
    assert jnp.allclose(y3, _reference(x3, w3, b3), atol=1e-4, rtol=1e-4)

    # Case 4: forced-tiny VMEM budget -> spatial tiling with a partial edge
    # block and the deeper (Buffered(3)) pipeline path.
    x4 = jax.random.normal(k1, (1, Cin, 8, 16, 42), jnp.float32)   # S = 5376
    y4 = jax.block_until_ready(
        out_conv(x4, weight, bias, vmem_budget_bytes=64 * 1024))
    assert y4.shape == (1, Cout, 8, 16, 42)
    assert jnp.allclose(y4, _reference(x4, weight, bias), atol=1e-5, rtol=1e-5)

    print("KERNEL_OK")
</pallas_src>

<mosaic_0001>
module attributes {stable_mosaic.version = 11 : i64} {
  func.func @_outconv_vpu_kernel(%arg0: i32, %arg1: i32, %arg2: memref<1x4x512xf32, #tpu.memory_space<vmem>>, %arg3: memref<3x4xf32, #tpu.memory_space<smem>>, %arg4: memref<3xf32, #tpu.memory_space<smem>>, %arg5: memref<1x3x512xf32, #tpu.memory_space<vmem>>) attributes {dimension_semantics = [#tpu.dimension_semantics<parallel>, #tpu.dimension_semantics<parallel>], iteration_bounds = array<i64: 2, 1>, scalar_prefetch = 0 : i64, scratch_operands = 0 : i64, tpu.core_type = #tpu.core_type<tc>, window_params = [{transform_indices = @transform_0, window_bounds = array<i64: 1, 4, 512>}, {transform_indices = @transform_1, window_bounds = array<i64: 3, 4>}, {transform_indices = @transform_2, window_bounds = array<i64: 3>}, {transform_indices = @transform_3, window_bounds = array<i64: 1, 3, 512>}]} {
    %c0 = arith.constant 0 : index
    %c0_0 = arith.constant 0 : index
    %c0_1 = arith.constant 0 : index
    %0 = vector.load %arg2[%c0, %c0_0, %c0_1] : memref<1x4x512xf32, #tpu.memory_space<vmem>>, vector<1x1x512xf32>
    %1 = vector.shape_cast %0 : vector<1x1x512xf32> to vector<1x512xf32>
    %c0_2 = arith.constant 0 : index
    %c0_3 = arith.constant 0 : index
    %2 = memref.load %arg3[%c0_2, %c0_3] : memref<3x4xf32, #tpu.memory_space<smem>>
    %3 = vector.broadcast %2 : f32 to vector<1x512xf32>
    %4 = arith.mulf %1, %3 : vector<1x512xf32>
    %c0_4 = arith.constant 0 : index
    %c1 = arith.constant 1 : index
    %c0_5 = arith.constant 0 : index
    %5 = vector.load %arg2[%c0_4, %c1, %c0_5] : memref<1x4x512xf32, #tpu.memory_space<vmem>>, vector<1x1x512xf32>
    %6 = vector.shape_cast %5 : vector<1x1x512xf32> to vector<1x512xf32>
    %c0_6 = arith.constant 0 : index
    %c1_7 = arith.constant 1 : index
    %7 = memref.load %arg3[%c0_6, %c1_7] : memref<3x4xf32, #tpu.memory_space<smem>>
    %8 = vector.broadcast %7 : f32 to vector<1x512xf32>
    %9 = arith.mulf %6, %8 : vector<1x512xf32>
    %10 = arith.addf %4, %9 : vector<1x512xf32>
    %c0_8 = arith.constant 0 : index
    %c2 = arith.constant 2 : index
    %c0_9 = arith.constant 0 : index
    %11 = vector.load %arg2[%c0_8, %c2, %c0_9] : memref<1x4x512xf32, #tpu.memory_space<vmem>>, vector<1x1x512xf32>
    %12 = vector.shape_cast %11 : vector<1x1x512xf32> to vector<1x512xf32>
    %c0_10 = arith.constant 0 : index
    %c2_11 = arith.constant 2 : index
    %13 = memref.load %arg3[%c0_10, %c2_11] : memref<3x4xf32, #tpu.memory_space<smem>>
    %14 = vector.broadcast %13 : f32 to vector<1x512xf32>
    %15 = arith.mulf %12, %14 : vector<1x512xf32>
    %16 = arith.addf %10, %15 : vector<1x512xf32>
    %c0_12 = arith.constant 0 : index
    %c3 = arith.constant 3 : index
    %c0_13 = arith.constant 0 : index
    %17 = vector.load %arg2[%c0_12, %c3, %c0_13] : memref<1x4x512xf32, #tpu.memory_space<vmem>>, vector<1x1x512xf32>
    %18 = vector.shape_cast %17 : vector<1x1x512xf32> to vector<1x512xf32>
    %c0_14 = arith.constant 0 : index
    %c3_15 = arith.constant 3 : index
    %19 = memref.load %arg3[%c0_14, %c3_15] : memref<3x4xf32, #tpu.memory_space<smem>>
    %20 = vector.broadcast %19 : f32 to vector<1x512xf32>
    %21 = arith.mulf %18, %20 : vector<1x512xf32>
    %22 = arith.addf %16, %21 : vector<1x512xf32>
    %c0_16 = arith.constant 0 : index
    %23 = memref.load %arg4[%c0_16] : memref<3xf32, #tpu.memory_space<smem>>
    %24 = vector.broadcast %23 : f32 to vector<1x512xf32>
    %25 = arith.addf %22, %24 : vector<1x512xf32>
    %c0_17 = arith.constant 0 : index
    %c0_18 = arith.constant 0 : index
    %c0_19 = arith.constant 0 : index
    %26 = vector.load %arg5[%c0_17, %c0_18, %c0_19] : memref<1x3x512xf32, #tpu.memory_space<vmem>>, vector<1x1x512xf32>
    %27 = vector.shape_cast %26 : vector<1x1x512xf32> to vector<1x512xf32>
    %28 = vector.shape_cast %25 : vector<1x512xf32> to vector<1x1x512xf32>
    tpu.vector_store %arg5[%c0_17, %c0_18, %c0_19], %28 {strides = array<i32>} : memref<1x3x512xf32, #tpu.memory_space<vmem>>, vector<1x1x512xf32>,
    %c0_20 = arith.constant 0 : index
    %c0_21 = arith.constant 0 : index
    %c0_22 = arith.constant 0 : index
    %29 = vector.load %arg2[%c0_20, %c0_21, %c0_22] : memref<1x4x512xf32, #tpu.memory_space<vmem>>, vector<1x1x512xf32>
    %30 = vector.shape_cast %29 : vector<1x1x512xf32> to vector<1x512xf32>
    %c1_23 = arith.constant 1 : index
    %c0_24 = arith.constant 0 : index
    %31 = memref.load %arg3[%c1_23, %c0_24] : memref<3x4xf32, #tpu.memory_space<smem>>
    %32 = vector.broadcast %31 : f32 to vector<1x512xf32>
    %33 = arith.mulf %30, %32 : vector<1x512xf32>
    %c0_25 = arith.constant 0 : index
    %c1_26 = arith.constant 1 : index
    %c0_27 = arith.constant 0 : index
    %34 = vector.load %arg2[%c0_25, %c1_26, %c0_27] : memref<1x4x512xf32, #tpu.memory_space<vmem>>, vector<1x1x512xf32>
    %35 = vector.shape_cast %34 : vector<1x1x512xf32> to vector<1x512xf32>
    %c1_28 = arith.constant 1 : index
    %c1_29 = arith.constant 1 : index
    %36 = memref.load %arg3[%c1_28, %c1_29] : memref<3x4xf32, #tpu.memory_space<smem>>
    %37 = vector.broadcast %36 : f32 to vector<1x512xf32>
    %38 = arith.mulf %35, %37 : vector<1x512xf32>
    %39 = arith.addf %33, %38 : vector<1x512xf32>
    %c0_30 = arith.constant 0 : index
    %c2_31 = arith.constant 2 : index
    %c0_32 = arith.constant 0 : index
    %40 = vector.load %arg2[%c0_30, %c2_31, %c0_32] : memref<1x4x512xf32, #tpu.memory_space<vmem>>, vector<1x1x512xf32>
    %41 = vector.shape_cast %40 : vector<1x1x512xf32> to vector<1x512xf32>
    %c1_33 = arith.constant 1 : index
    %c2_34 = arith.constant 2 : index
    %42 = memref.load %arg3[%c1_33, %c2_34] : memref<3x4xf32, #tpu.memory_space<smem>>
    %43 = vector.broadcast %42 : f32 to vector<1x512xf32>
    %44 = arith.mulf %41, %43 : vector<1x512xf32>
    %45 = arith.addf %39, %44 : vector<1x512xf32>
    %c0_35 = arith.constant 0 : index
    %c3_36 = arith.constant 3 : index
    %c0_37 = arith.constant 0 : index
    %46 = vector.load %arg2[%c0_35, %c3_36, %c0_37] : memref<1x4x512xf32, #tpu.memory_space<vmem>>, vector<1x1x512xf32>
    %47 = vector.shape_cast %46 : vector<1x1x512xf32> to vector<1x512xf32>
    %c1_38 = arith.constant 1 : index
    %c3_39 = arith.constant 3 : index
    %48 = memref.load %arg3[%c1_38, %c3_39] : memref<3x4xf32, #tpu.memory_space<smem>>
    %49 = vector.broadcast %48 : f32 to vector<1x512xf32>
    %50 = arith.mulf %47, %49 : vector<1x512xf32>
    %51 = arith.addf %45, %50 : vector<1x512xf32>
    %c1_40 = arith.constant 1 : index
    %52 = memref.load %arg4[%c1_40] : memref<3xf32, #tpu.memory_space<smem>>
    %53 = vector.broadcast %52 : f32 to vector<1x512xf32>
    %54 = arith.addf %51, %53 : vector<1x512xf32>
    %c0_41 = arith.constant 0 : index
    %c1_42 = arith.constant 1 : index
    %c0_43 = arith.constant 0 : index
    %55 = vector.load %arg5[%c0_41, %c1_42, %c0_43] : memref<1x3x512xf32, #tpu.memory_space<vmem>>, vector<1x1x512xf32>
    %56 = vector.shape_cast %55 : vector<1x1x512xf32> to vector<1x512xf32>
    %57 = vector.shape_cast %54 : vector<1x512xf32> to vector<1x1x512xf32>
    tpu.vector_store %arg5[%c0_41, %c1_42, %c0_43], %57 {strides = array<i32>} : memref<1x3x512xf32, #tpu.memory_space<vmem>>, vector<1x1x512xf32>,
    %c0_44 = arith.constant 0 : index
    %c0_45 = arith.constant 0 : index
    %c0_46 = arith.constant 0 : index
    %58 = vector.load %arg2[%c0_44, %c0_45, %c0_46] : memref<1x4x512xf32, #tpu.memory_space<vmem>>, vector<1x1x512xf32>
    %59 = vector.shape_cast %58 : vector<1x1x512xf32> to vector<1x512xf32>
    %c2_47 = arith.constant 2 : index
    %c0_48 = arith.constant 0 : index
    %60 = memref.load %arg3[%c2_47, %c0_48] : memref<3x4xf32, #tpu.memory_space<smem>>
    %61 = vector.broadcast %60 : f32 to vector<1x512xf32>
    %62 = arith.mulf %59, %61 : vector<1x512xf32>
    %c0_49 = arith.constant 0 : index
    %c1_50 = arith.constant 1 : index
    %c0_51 = arith.constant 0 : index
    %63 = vector.load %arg2[%c0_49, %c1_50, %c0_51] : memref<1x4x512xf32, #tpu.memory_space<vmem>>, vector<1x1x512xf32>
    %64 = vector.shape_cast %63 : vector<1x1x512xf32> to vector<1x512xf32>
    %c2_52 = arith.constant 2 : index
    %c1_53 = arith.constant 1 : index
    %65 = memref.load %arg3[%c2_52, %c1_53] : memref<3x4xf32, #tpu.memory_space<smem>>
    %66 = vector.broadcast %65 : f32 to vector<1x512xf32>
    %67 = arith.mulf %64, %66 : vector<1x512xf32>
    %68 = arith.addf %62, %67 : vector<1x512xf32>
    %c0_54 = arith.constant 0 : index
    %c2_55 = arith.constant 2 : index
    %c0_56 = arith.constant 0 : index
    %69 = vector.load %arg2[%c0_54, %c2_55, %c0_56] : memref<1x4x512xf32, #tpu.memory_space<vmem>>, vector<1x1x512xf32>
    %70 = vector.shape_cast %69 : vector<1x1x512xf32> to vector<1x512xf32>
    %c2_57 = arith.constant 2 : index
    %c2_58 = arith.constant 2 : index
    %71 = memref.load %arg3[%c2_57, %c2_58] : memref<3x4xf32, #tpu.memory_space<smem>>
    %72 = vector.broadcast %71 : f32 to vector<1x512xf32>
    %73 = arith.mulf %70, %72 : vector<1x512xf32>
    %74 = arith.addf %68, %73 : vector<1x512xf32>
    %c0_59 = arith.constant 0 : index
    %c3_60 = arith.constant 3 : index
    %c0_61 = arith.constant 0 : index
    %75 = vector.load %arg2[%c0_59, %c3_60, %c0_61] : memref<1x4x512xf32, #tpu.memory_space<vmem>>, vector<1x1x512xf32>
    %76 = vector.shape_cast %75 : vector<1x1x512xf32> to vector<1x512xf32>
    %c2_62 = arith.constant 2 : index
    %c3_63 = arith.constant 3 : index
    %77 = memref.load %arg3[%c2_62, %c3_63] : memref<3x4xf32, #tpu.memory_space<smem>>
    %78 = vector.broadcast %77 : f32 to vector<1x512xf32>
    %79 = arith.mulf %76, %78 : vector<1x512xf32>
    %80 = arith.addf %74, %79 : vector<1x512xf32>
    %c2_64 = arith.constant 2 : index
    %81 = memref.load %arg4[%c2_64] : memref<3xf32, #tpu.memory_space<smem>>
    %82 = vector.broadcast %81 : f32 to vector<1x512xf32>
    %83 = arith.addf %80, %82 : vector<1x512xf32>
    %c0_65 = arith.constant 0 : index
    %c2_66 = arith.constant 2 : index
    %c0_67 = arith.constant 0 : index
    %84 = vector.load %arg5[%c0_65, %c2_66, %c0_67] : memref<1x3x512xf32, #tpu.memory_space<vmem>>, vector<1x1x512xf32>
    %85 = vector.shape_cast %84 : vector<1x1x512xf32> to vector<1x512xf32>
    %86 = vector.shape_cast %83 : vector<1x512xf32> to vector<1x1x512xf32>
    tpu.vector_store %arg5[%c0_65, %c2_66, %c0_67], %86 {strides = array<i32>} : memref<1x3x512xf32, #tpu.memory_space<vmem>>, vector<1x1x512xf32>,
    return
  }
  func.func @transform_0(%arg0: i32, %arg1: i32) -> (i32, i32, i32) {
    %c0_i32 = arith.constant 0 : i32
    %c0_i32_0 = arith.constant 0 : i32
    return %arg0, %c0_i32, %arg1 : i32, i32, i32
  }
  func.func @transform_1(%arg0: i32, %arg1: i32) -> (i32, i32) {
    %c0_i32 = arith.constant 0 : i32
    %c0_i32_0 = arith.constant 0 : i32
    %c0_i32_1 = arith.constant 0 : i32
    return %c0_i32, %c0_i32_0 : i32, i32
  }
  func.func @transform_2(%arg0: i32, %arg1: i32) -> i32 {
    %c0_i32 = arith.constant 0 : i32
    %c0_i32_0 = arith.constant 0 : i32
    return %c0_i32 : i32
  }
  func.func @transform_3(%arg0: i32, %arg1: i32) -> (i32, i32, i32) {
    %c0_i32 = arith.constant 0 : i32
    %c0_i32_0 = arith.constant 0 : i32
    return %arg0, %c0_i32, %arg1 : i32, i32, i32
  }
}

</mosaic_0001>

<bundles_post_ra>
// kernel: tpu_custom_call.1
= control target key start
LH: loop header
LB: loop body
LE: loop exit
PB: predicated region body
PF: predicated region fallthrough
CT: control target
= control target key end

     0   :  { %8 = vsyncpa [#allocation3], 0  ;;  %s872_s0 = inlined_call_operand.hbm [shape: f32[2,4,512], index: 0, kind: input, shape index: {}]   ;;  %s873_s1 = inlined_call_operand.hbm [shape: f32[3,4], index: 1, kind: input, shape index: {}]   ;;  %s874_s2 = inlined_call_operand.vmem [shape: f32[3], index: 2, kind: input, shape index: {}]   ;;  %s875_s3 = inlined_call_operand.vmem [shape: f32[2,3,512], index: 3, kind: output, shape index: {}]  }
   0x1   :  { %10 = vsyncpa [#allocation3 + $0x1], 0 }
   0x2   :  { %11 = vsyncpa [#allocation4], 0 }
   0x3   :  { %12 = vsyncpa [#allocation5], 0  ;;  %s695_s12 = smov 0   ;;  %s697_s13 = smov 0  }
   0x4   :  { %s699_s14 = smov 0   ;;  %s701_s15 = smov 0  }
   0x5   :  { %s703_s16 = smov 0   ;;  %s705_s17 = smov 0  }
   0x6 LB: > { %s439_s18 = sadd.s32 4294967295, %s670_s17   ;;  %p52_p0 = scmp.ne.s32.totalorder %s654_s13, %s650_s12  ;;  %s670_s17 = sphi %s705_s17, %s18_s17   ;;  %s666_s16 = sphi %s703_s16, %s888_s16   ;;  %s662_s15 = sphi %s701_s15, %s887_s15   ;;  %s658_s14 = sphi %s699_s14, %s886_s14   ;;  %s654_s13 = sphi %s697_s13, %s885_s13   ;;  %s650_s12 = sphi %s695_s12, %s884_s12  }
   0x7   : > { %p725_p1 = scmp.eq.s32.totalorder %s439_s18, 0  ;;  %p441_p2 = scmp.ge.s32.totalorder %s670_s17, 1 }
   0x8   : > { %p133_p3 = scmp.lt.s32.totalorder %s670_s17, 3  ;;  %s155_s24 = sshll.u32 %s874_s2, 4  ;;  %s156_s24 = int_to_ptr.vmem [resolvable:$true] %s155_s24 }
   0x9   : > { %p733_p4 = por %p725_p1, %p52_p0  ;;  %s30_s26 = sadd.s32 1, %s666_s16 }
   0xa   : > { %p737_p5 = pnand %p441_p2, %p133_p3  ;;  %p753_p8 = scmp.ge.s32.totalorder %s30_s26, 2 }
   0xb   : > { %s672_s28 = smov [#allocation6]   ;;  %s569_s4 = scalar_lea.vmem %s156_s24, 16 }
   0xc   : > { %p492_p6 = pneg %p737_p5  ;;  %p570_p9 = scmp.ne.s32.totalorder %s156_s24, %s569_s4 }
   0xd   : > { %p577_p13 = scmp.lt.s32.totalorder %s156_s24, %s156_s24  ;;  %p578_p0 = scmp.lt.s32.totalorder %s569_s4, %s569_s4 }
   0xe   : > { %p748_p7 = pnand %p492_p6, %p725_p1 }
   0xf   : > { %p579_p2 = por %p578_p0, %p577_p13 }
  0x10   : > { %495 = dma.hbm_to_smem (!%p748_p7), %s873_s1, 64, %s672_s28, [#allocation4]  }
  0x11   : > { %p571_p10 = pneg %p748_p7 }
  0x13   : > { %p572_p11 = pnand %p571_p10, %p570_p9 }
  0x15   : > { %p573_p12 = pneg %p572_p11 }
  0x17   : > { %p580_p3 = pnand %p579_p2, %p573_p12 }
  0x19   : > { %583 = shalt.err (!%p580_p3)
}
  0x1a   : > { %s673_s5 = smov [#allocation7]   ;;  %s890_s26 = smov (%p753_p8, %s30_s26), 0 }
  0x1b   : > { %498 = dma.vmem_to_smem (!%p748_p7), %s156_s24, 16, %s673_s5, [#allocation5]  }
  0x1c   : > { %s39_s6 = sadd.s32 1, %s658_s14  ;;  %p46_p6 = scmp.ne.s32.totalorder %s658_s14, %s654_s13 }
  0x1d   : > { %s34_s7 = ssub.s32 %s666_s16, %s890_s26  ;;  %p47_p9 = scmp.eq.s32.totalorder %s670_s17, 0 }
  0x1e   : > { %p37_p10 = scmp.eq.s32.totalorder %s34_s7, 0  ;;  %p505_p11 = scmp.lt.s32.totalorder %s670_s17, 2 }
  0x1f   : > { %p48_p12 = por %p47_p9, %p46_p6  ;;  %s166_s8 = sand.u32 1, %s658_s14  }
  0x20   : > { %s779_s9 = scalar_select %p37_p10, %s658_s14, %s39_s6  }
  0x21   : > { %s445_s10 = sshll.u32 %s166_s8, 4  ;;  %s480_s11 = sshll.u32 %s666_s16, 8 }
  0x22   : > { %s178_s22 = scalar_lea.hbm %s872_s0, %s480_s11  ;;  %s170_s23 = scalar_lea.vmem [#allocation2], %s445_s10 }
  0x23   : > { %s180_s24 = sshll.u32 %s170_s23, 4  ;;  %p785_p7 = pnand %p505_p11, %p48_p12  ;;  %s181_s24 = int_to_ptr.vmem [resolvable:$true] %s180_s24 }
  0x24   : > { %s167_s27 = scalar_lea.sflag [#allocation3], %s166_s8  ;;  %s597_s28 = scalar_lea.vmem %s181_s24, 256 }
  0x25   : > { %p586_p8 = pneg %p785_p7  ;;  %p598_p13 = scmp.ne.s32.totalorder %s181_s24, %s597_s28 }
  0x26   : > { %s674_s29 = smov [#allocation2]  }
  0x27   : > { %p600_p0 = pnand %p598_p13, %p586_p8  ;;  %s602_s30 = sshll.u32 %s674_s29, 4  ;;  %s603_s30 = int_to_ptr.vmem [resolvable:$false] %s602_s30 }
  0x28   : > { %s604_s4 = scalar_lea.vmem %s603_s30, 512  ;;  %p605_p3 = scmp.lt.s32.totalorder %s181_s24, %s603_s30 }
  0x29   : > { %p601_p2 = pneg %p600_p0  ;;  %p606_p6 = scmp.lt.s32.totalorder %s604_s4, %s597_s28 }
  0x2b   : > { %p607_p9 = por %p606_p6, %p605_p3 }
  0x2d   : > { %p608_p10 = pnand %p607_p9, %p601_p2 }
  0x2f   : > { %611 = shalt.err (!%p608_p10)
}
  0x30   : > { %502 = dma.hbm_to_vmem [thread:$0]  (!%p785_p7), %s178_s22, 256, %s181_s24, %s167_s27  }
  0x31   : > { %189 = sbr.rel (%p737_p5) target bundleno = 90 (0x5a), region = 32  ;;  %s191_s5 = sand.u32 (!%p737_p5), 1, %s654_s13  }
  0x32   : > { %s449_s6 = sshll.u32 (!%p737_p5), %s191_s5, 4  ;;  %s192_s7 = scalar_lea.sflag (!%p737_p5), [#allocation3], %s191_s5 }
  0x33   : > { %s796_s8 = scalar_lea.vmem (!%p737_p5), [#allocation2], %s449_s6 }
  0x36   : > { %637 = dma.done.wait (%p733_p4), %s192_s7, 256  }
  0x37   : > { %639 = vsyncadd (%p733_p4), %s192_s7, 4294967040 }
  0x38   : > { %641 = dma.done.wait (%p725_p1), [#allocation4], 64  }
  0x39   : > { %643 = vsyncadd (%p725_p1), [#allocation4], 4294967232 }
  0x3a   : > { %645 = dma.done.wait (%p725_p1), [#allocation5], 16  }
  0x3b   : > { %647 = vsyncadd (%p725_p1), [#allocation5], 4294967280 }
  0x3c   : > { %208 = sfence }
  0x3d   : > { %p233_p5 = scmp.lt.s32.totalorder %s662_s15, 1  ;;  %s243_s20 = sld [smem:[#allocation6]]  ;;  %v242_v0 = vld [vmem:[%s796_s8] ss:$4 sm:$0xf]  ;;  %v267_v14 = vlaneseq }
  0x3e   : > { %s455_s21 = sld [smem:[#allocation6 + $0x1]]  ;;  %v454_v1 = vld [vmem:[%s796_s8 + $0x1] ss:$4 sm:$0xf] }
  0x3f   : > { %s892_s15 = smov (!%p233_p5, %s662_s15), 1  ;;  %s457_s10 = sld [smem:[#allocation6 + $0x2]]  ;;  %v456_v5 = vld [vmem:[%s796_s8 + $0x2] ss:$4 sm:$0xf]  ;;  %vm835_vm0 = vcmp.lt.s32.totalorder %v267_v14, 512 }
  0x40   : > { %s459_s11 = sld [smem:[#allocation6 + $0x3]]  ;;  %v458_v7 = vld [vmem:[%s796_s8 + $0x3] ss:$4 sm:$0xf]  ;;  %s481_s27 = sshll.u32 %s892_s15, 4 }
  0x41   : > { %s816_s12 = sld [smem:[#allocation7]]  ;;  %v272_v12 = vld [vmem:[%s796_s8] ss:$4 sm:$0xf]  ;;  %s833_s15 = scalar_lea.vmem %s875_s3, %s481_s27 }
  0x42   : > { %s460_s19 = sld [smem:[#allocation6 + $0x80]]  ;;  %v461_v15 = vld [vmem:[%s796_s8 + $0x1] ss:$4 sm:$0xf] }
  0x43   : > { %v244_v2 = vstv %s243_s20  ;;  %s462_s18 = sld [smem:[#allocation6 + $0x81]]  ;;  %v463_v18 = vld [vmem:[%s796_s8 + $0x2] ss:$4 sm:$0xf] }
  0x44   : > { %v245_v3 = vmul.f32 %v244_v2, %v242_v0  ;;  %v249_v4 = vstv %s455_s21  ;;  %s464_s22 = sld [smem:[#allocation6 + $0x82]]  ;;  %v465_v22 = vld [vmem:[%s796_s8 + $0x3] ss:$4 sm:$0xf] }
  0x45   : > { %v250_v6 = vmul.f32 %v454_v1, %v249_v4  ;;  %v255_v8 = vstv %s457_s10  ;;  %s820_s23 = sld [smem:[#allocation6 + $0x83]]  ;;  %v296_v29 = vld [vmem:[%s796_s8] ss:$4 sm:$0xf] }
  0x46   : > { %v256_v10 = vmul.f32 %v456_v5, %v255_v8  ;;  %v261_v11 = vstv %s459_s11  ;;  %s823_s24 = sld [smem:[#allocation7 + $0x1]]  ;;  %v470_v33 = vld [vmem:[%s796_s8 + $0x1] ss:$4 sm:$0xf] }
  0x47   : > { %v251_v9 = vadd.f32 %v250_v6, %v245_v3  ;;  %v262_v13 = vmul.f32 %v458_v7, %v261_v11  ;;  %s469_s25 = sld [smem:[#allocation6 + $0x100]]  ;;  %v265_v19 = vstv %s816_s12  ;;  %v472_v35 = vld [vmem:[%s796_s8 + $0x2] ss:$4 sm:$0xf] }
  0x48   : > { %v274_v17 = vstv %s460_s19  ;;  %s471_s28 = sld [smem:[#allocation6 + $0x101]]  ;;  %v474_v39 = vld [vmem:[%s796_s8 + $0x3] ss:$4 sm:$0xf] }
  0x49   : > { %v257_v16 = vadd.f32 %v256_v10, %v251_v9  ;;  %v275_v20 = vmul.f32 %v274_v17, %v272_v12  ;;  %v278_v21 = vstv %s462_s18  ;;  %s473_s29 = sld [smem:[#allocation6 + $0x102]] }
  0x4a   : > { %v279_v24 = vmul.f32 %v461_v15, %v278_v21  ;;  %v283_v25 = vstv %s464_s22  ;;  %s475_s30 = sld [smem:[#allocation6 + $0x103]] }
  0x4b   : > { %v263_v23 = vadd.f32 %v262_v13, %v257_v16  ;;  %v284_v27 = vmul.f32 %v463_v18, %v283_v25  ;;  %v288_v28 = vstv %s820_s23  ;;  %s476_s6 = sld [smem:[#allocation7 + $0x2]] }
  0x4c   : > { %v280_v31 = vadd.f32 %v279_v24, %v275_v20  ;;  %v289_v32 = vmul.f32 %v465_v22, %v288_v28  ;;  %v292_v40 = vstv %s823_s24 }
  0x4d   : > { %v266_v30 = vadd.f32 %v265_v19, %v263_v23  ;;  %v298_v34 = vstv %s469_s25 }
  0x4e   : > { %v285_v36 = vadd.f32 %v284_v27, %v280_v31  ;;  %v299_v37 = vmul.f32 %v298_v34, %v296_v29  ;;  %v302_v38 = vstv %s471_s28 }
  0x4f   : > { %271 = vst.msk [vmem:[%s833_s15] ss:$4 sm:$0xf] %vm835_vm0, %v266_v30  ;;  %v303_v41 = vmul.f32 %v470_v33, %v302_v38  ;;  %v307_v42 = vstv %s473_s29 }
  0x50   : > { %v290_v43 = vadd.f32 %v289_v32, %v285_v36  ;;  %v308_v44 = vmul.f32 %v472_v35, %v307_v42  ;;  %v312_v45 = vstv %s475_s30 }
  0x51   : > { %v304_v46 = vadd.f32 %v303_v41, %v299_v37  ;;  %v313_v47 = vmul.f32 %v474_v39, %v312_v45  ;;  %v316_v50 = vstv %s476_s6 }
  0x52   : > { %v293_v48 = vadd.f32 %v292_v40, %v290_v43 }
  0x53   : > { %v309_v49 = vadd.f32 %v308_v44, %v304_v46 }
  0x54   : > { %468 = vst.msk [vmem:[%s833_s15 + $0x1] ss:$4 sm:$0xf] %vm835_vm0, %v293_v48 }
  0x55   : > { %v314_v51 = vadd.f32 %v313_v47, %v309_v49 }
  0x57   : > { %v317_v52 = vadd.f32 %v316_v50, %v314_v51 }
  0x59   : > { %477 = vst.msk [vmem:[%s833_s15 + $0x2] ss:$4 sm:$0xf] %vm835_vm0, %v317_v52 }
  0x5a PF: > { %s18_s17 = sadd.s32 1, %s670_s17   ;;  %s884_s12 = smov %s654_s13 }
  0x5b   : > { %p15_p1 = scmp.ge.s32.totalorder %s18_s17, 4   ;;  %s885_s13 = smov %s658_s14 }
  0x5c   : > { %s886_s14 = smov %s779_s9  ;;  %s887_s15 = smov %s666_s16 }
  0x5d   : > { %s888_s16 = smov %s890_s26  ;;  %17 = sbr.rel (!%p15_p1) target bundleno = 6 (0x6), region = 87 }
  0x62   :  { %350 = vsyncpa [#allocation3], 1 }
  0x63   :  { %352 = vsyncpa [#allocation3 + $0x1], 1 }
  0x64   :  { %353 = vsyncpa [#allocation4], 1 }
  0x65   :  { %355 = vsyncpa [#allocation4 + $0x1], 1 }
  0x66   :  { %356 = vsyncpa [#allocation5], 1 }
  0x67   :  { %358 = vsyncpa [#allocation5 + $0x1], 1 }

</bundles_post_ra>
